<compile_context>
chip_gen: v7x
topology: tpu7x:2x2x1
jax: 0.10.0
libtpu: 0.0.40
codegen_flags: <defaults>
</compile_context>

<pallas_src>
import jax
import jax.numpy as jnp
from jax.experimental import pallas as pl
from jax.experimental.pallas import tpu as pltpu


def classification_net_kernel(scal_ref, x_ref, w1_ref, ew_ref, cw_ref, o_ref):
    # scal_ref (SMEM, f32[4]): [a_e (embedding PReLU), a_c (classifier PReLU),
    #                           b2[0], b2[1] (embedding output bias)]
    # x_ref  : (TB, D)   f32   input tile (cast to bf16 in-kernel for the MXU)
    # w1_ref : (D, HID)  bf16  embedding layer-1 weight (stored as (in, out))
    # ew_ref : (3, HID)  f32   row0=b1, row1=w2[:,0], row2=w2[:,1]
    # cw_ref : (3, W)    f32   row0=bc (padded -1e30), row1=wc[0,:], row2=wc[1,:]
    # o_ref  : (TB, W)   f32   lane-dense log_softmax slab
    a_e = scal_ref[0]
    a_c = scal_ref[1]
    b2_0 = scal_ref[2]
    b2_1 = scal_ref[3]

    b1 = ew_ref[0:1, :]          # (1, HID)
    w2c0 = ew_ref[1:2, :]        # (1, HID)
    w2c1 = ew_ref[2:3, :]        # (1, HID)
    bc = cw_ref[0:1, :]          # (1, W)   (-1e30 beyond n_classes)
    wc0 = cw_ref[1:2, :]         # (1, W)
    wc1 = cw_ref[2:3, :]         # (1, W)

    # --- embedding_net layer 1: f32 DMA, in-kernel bf16 cast, MXU f32 acc ---
    x_bf = x_ref[...].astype(jnp.bfloat16)
    h = jnp.dot(x_bf, w1_ref[...], preferred_element_type=jnp.float32) + b1
    h = jnp.where(h > 0, h, a_e * h)                   # shared-param PReLU

    # --- embedding_net layer 2: exact-f32 VPU mul + lane reduce (K=HID,N=2) ---
    emb0 = jnp.sum(h * w2c0, axis=-1, keepdims=True) + b2_0   # (TB, 1)
    emb1 = jnp.sum(h * w2c1, axis=-1, keepdims=True) + b2_1   # (TB, 1)

    # --- ClassificationNet.nonlinear = nn.PReLU() (single shared param) ---
    emb0 = jnp.where(emb0 > 0, emb0, a_c * emb0)
    emb1 = jnp.where(emb1 > 0, emb1, a_c * emb1)

    # --- fc1 (Linear(2, n_classes)) as VPU broadcast-FMA (no K=2 MXU op) ---
    logits = emb0 * wc0 + emb1 * wc1 + bc              # (TB, W)

    # --- F.log_softmax(logits, dim=-1); padded columns carry bc = -1e30 so
    #     exp() underflows to exactly 0 and does not perturb the normalizer ---
    m = jnp.max(logits, axis=-1, keepdims=True)
    z = logits - m
    lse = jnp.log(jnp.sum(jnp.exp(z), axis=-1, keepdims=True))
    o_ref[...] = (z - lse).astype(o_ref.dtype)


def _round_up(x, m):
    return ((x + m - 1) // m) * m


def _tpu_vmem_and_cores():
    """Physical VMEM bytes per core and TensorCores per chip (best effort)."""
    vmem_cap = 64 << 20       # conservative fallback (v7x per-TC capacity)
    n_cores = 1
    try:
        info = pltpu.get_tpu_info()
        vmem_cap = int(getattr(info, "vmem_capacity_bytes", vmem_cap))
        n_cores = int(getattr(info, "num_cores",
                              getattr(info, "tensorcores_per_chip", 1)))
    except Exception:
        pass
    return vmem_cap, n_cores


def _pick_tile(B, D, HID, W, vmem_cap, n_cores):
    """Largest batch tile fitting the double-buffered VMEM budget."""
    budget = int(vmem_cap * 0.55)                      # compiler headroom
    resident = D * HID * 2 + 3 * HID * 4 + 3 * W * 4   # single-buffered weights
    per_row = 2 * D * 4 + 2 * W * 4                    # 2x-buffered x + out rows
    tb_cap = max(8, (budget - resident) // per_row)
    b_up = _round_up(max(B, 1), 8)
    tb = 8
    for cand in (1024, 512, 256, 128, 64, 32, 16, 8):
        if cand <= tb_cap and cand <= b_up:
            tb = cand
            break
    # Dual-TensorCore chips (v7x): make sure the "parallel" batch grid has at
    # least 2 steps so both cores get a shard (no-op on 1-TC chips).
    if n_cores >= 2 and b_up >= 16 and pl.cdiv(B, tb) < 2:
        tb = _round_up(max(b_up // 2, 8), 8)
    return tb


def _pack_params(params, n_classes, width):
    """Pack small parameters: 4 scalars -> SMEM array, rows -> lane-dense slabs."""
    w1, b1, a_e, w2, b2, a_c, wc, bc = params
    hid = w1.shape[1]
    ew = jnp.concatenate(
        [b1.reshape(1, hid).astype(jnp.float32),
         w2[:, 0].reshape(1, hid).astype(jnp.float32),
         w2[:, 1].reshape(1, hid).astype(jnp.float32)], axis=0)        # (3, HID)
    bc_row = jnp.full((1, width), -1e30, jnp.float32).at[:, :n_classes].set(
        bc.reshape(1, n_classes).astype(jnp.float32))
    wc_rows = jnp.zeros((2, width), jnp.float32).at[:, :n_classes].set(
        wc.astype(jnp.float32))
    cw = jnp.concatenate([bc_row, wc_rows], axis=0)                    # (3, W)
    scal = jnp.stack([a_e[0, 0], a_c[0, 0], b2[0, 0], b2[0, 1]]).astype(jnp.float32)
    return scal, w1.astype(jnp.bfloat16), ew, cw


def classification_net_forward(x_nchw, params):
    """x_nchw: (B, C, H, W) float32. params: tuple of parameter arrays."""
    w1, wc = params[0], params[6]
    B = x_nchw.shape[0]
    D = x_nchw.shape[1] * x_nchw.shape[2] * x_nchw.shape[3]
    HID = w1.shape[1]
    n_classes = wc.shape[1]
    assert D % 128 == 0 and HID % 128 == 0, "keep D and HID lane-dense (x128)"

    # classifier slab width decoupled from HID (just padded to a lane multiple)
    W = _round_up(n_classes, 128)

    vmem_cap, n_cores = _tpu_vmem_and_cores()
    TB = _pick_tile(B, D, HID, W, vmem_cap, n_cores)
    nb = pl.cdiv(B, TB)          # ragged tail handled by Pallas block masking

    # flatten exactly like x.view(B, -1); NO host-side pad and NO host-side
    # bf16 cast (the cast happens in-kernel, saving an extra HBM round trip).
    x2d = x_nchw.reshape(B, D)

    scal, w1_b, ew, cw = _pack_params(params, n_classes, W)

    resident = D * HID * 2 + 3 * HID * 4 + 3 * W * 4
    needed = 2 * resident + 2 * TB * D * 4 + 2 * TB * W * 4
    vmem_limit = int(min(vmem_cap,
                         max(int(needed * 1.25) + (2 << 20), 32 << 20)))

    cost = pl.CostEstimate(
        flops=2 * B * D * HID + 4 * B * HID + 6 * B * W,
        transcendentals=B * W + B,
        bytes_accessed=(B * D * 4 + D * HID * 2 + 3 * HID * 4 + 3 * W * 4
                        + B * W * 4),
    )

    def run(single_buffer_weights):
        if single_buffer_weights:
            def const_spec(shape):
                return pl.BlockSpec(shape, lambda i, s: (0, 0),
                                    pipeline_mode=pl.Buffered(1))
        else:
            def const_spec(shape):
                return pl.BlockSpec(shape, lambda i, s: (0, 0))

        grid_spec = pltpu.PrefetchScalarGridSpec(
            num_scalar_prefetch=1,                # scal -> SMEM scalar path
            grid=(nb,),
            in_specs=[
                pl.BlockSpec((TB, D), lambda i, s: (i, 0)),   # batch-tiled x
                const_spec((D, HID)),                         # resident weights
                const_spec((3, HID)),
                const_spec((3, W)),
            ],
            out_specs=pl.BlockSpec((TB, W), lambda i, s: (i, 0)),
        )
        return pl.pallas_call(
            classification_net_kernel,
            out_shape=jax.ShapeDtypeStruct((B, W), jnp.float32),
            grid_spec=grid_spec,
            compiler_params=pltpu.CompilerParams(
                dimension_semantics=("parallel",),
                vmem_limit_bytes=vmem_limit),
            cost_estimate=cost,
        )(scal, x2d, w1_b, ew, cw)

    try:
        out = run(single_buffer_weights=True)
    except Exception:
        # Fallback for Pallas versions that reject pl.Buffered(1): default
        # double-buffered weights (still correct, slightly more VMEM).
        out = run(single_buffer_weights=False)

    # lane slice only (batch dim is already exact); downstream code may
    # consume the padded (B, W) slab directly to avoid even this re-read.
    return out[:, :n_classes]


def init_params(key, D, H, n_classes):
    """Deterministic synthetic parameters (weights stored pre-transposed as
    (in, out) so the kernel does x @ W; PyTorch Linear stores (out, in))."""
    k1, k2, k3 = jax.random.split(key, 3)
    w1 = jax.random.normal(k1, (D, H), jnp.float32) * 0.05
    b1 = jnp.zeros((1, H), jnp.float32)
    a_e = jnp.full((1, 1), 0.25, jnp.float32)      # PReLU default init
    w2 = jax.random.normal(k2, (H, 2), jnp.float32) * 0.2
    b2 = jnp.zeros((1, 2), jnp.float32)
    a_c = jnp.full((1, 1), 0.25, jnp.float32)      # ClassificationNet.nonlinear
    wc = jax.random.normal(k3, (2, n_classes), jnp.float32) * 0.5
    bc = jnp.zeros((1, n_classes), jnp.float32)
    return (w1, b1, a_e, w2, b2, a_c, wc, bc)


if __name__ == "__main__":
    # small shapes: batch=2, channels=4, spatial=16x16, hidden=128 (lane-dense),
    # n_classes=10
    B, C, H_sp, W_sp = 2, 4, 16, 16
    D = C * H_sp * W_sp
    HID = 128
    N_CLASSES = 10

    key = jax.random.PRNGKey(0)
    kx, kp = jax.random.split(key)
    x = jax.random.normal(kx, (B, C, H_sp, W_sp), jnp.float32)
    params = init_params(kp, D, HID, N_CLASSES)

    scores = classification_net_forward(x, params)
    scores = jax.block_until_ready(scores)

    # sanity: log_softmax rows must exponentiate-sum to 1
    row_sums = jnp.exp(scores).sum(axis=-1)
    assert scores.shape == (B, N_CLASSES)
    assert bool(jnp.all(jnp.isfinite(scores)))
    assert bool(jnp.all(jnp.abs(row_sums - 1.0) < 1e-5))

    print("KERNEL_OK")
</pallas_src>

<mosaic_0001>
module attributes {stable_mosaic.version = 11 : i64} {
  func.func @classification_net_kernel(%arg0: i32, %arg1: memref<4xf32, #tpu.memory_space<smem>>, %arg2: memref<8x1024xf32, #tpu.memory_space<vmem>>, %arg3: memref<1024x128xbf16, #tpu.memory_space<vmem>>, %arg4: memref<3x128xf32, #tpu.memory_space<vmem>>, %arg5: memref<3x128xf32, #tpu.memory_space<vmem>>, %arg6: memref<8x128xf32, #tpu.memory_space<vmem>>) attributes {dimension_semantics = [#tpu.dimension_semantics<parallel>], iteration_bounds = array<i64: 1>, scalar_prefetch = 1 : i64, scratch_operands = 0 : i64, tpu.core_type = #tpu.core_type<tc>, window_params = [{transform_indices = @transform_0, window_bounds = array<i64: 8, 1024>}, {pipeline_mode = #tpu.pipeline_mode<synchronous>, transform_indices = @transform_1, window_bounds = array<i64: 1024, 128>}, {pipeline_mode = #tpu.pipeline_mode<synchronous>, transform_indices = @transform_2, window_bounds = array<i64: 3, 128>}, {pipeline_mode = #tpu.pipeline_mode<synchronous>, transform_indices = @transform_3, window_bounds = array<i64: 3, 128>}, {transform_indices = @transform_4, window_bounds = array<i64: 8, 128>}]} {
    %c0 = arith.constant 0 : index
    %0 = memref.load %arg1[%c0] : memref<4xf32, #tpu.memory_space<smem>>
    %c1 = arith.constant 1 : index
    %1 = memref.load %arg1[%c1] : memref<4xf32, #tpu.memory_space<smem>>
    %c2 = arith.constant 2 : index
    %2 = memref.load %arg1[%c2] : memref<4xf32, #tpu.memory_space<smem>>
    %c3 = arith.constant 3 : index
    %3 = memref.load %arg1[%c3] : memref<4xf32, #tpu.memory_space<smem>>
    %c0_0 = arith.constant 0 : index
    %c0_1 = arith.constant 0 : index
    %4 = vector.load %arg4[%c0_0, %c0_1] : memref<3x128xf32, #tpu.memory_space<vmem>>, vector<1x128xf32>
    %c1_2 = arith.constant 1 : index
    %c0_3 = arith.constant 0 : index
    %5 = vector.load %arg4[%c1_2, %c0_3] : memref<3x128xf32, #tpu.memory_space<vmem>>, vector<1x128xf32>
    %c2_4 = arith.constant 2 : index
    %c0_5 = arith.constant 0 : index
    %6 = vector.load %arg4[%c2_4, %c0_5] : memref<3x128xf32, #tpu.memory_space<vmem>>, vector<1x128xf32>
    %c0_6 = arith.constant 0 : index
    %c0_7 = arith.constant 0 : index
    %7 = vector.load %arg5[%c0_6, %c0_7] : memref<3x128xf32, #tpu.memory_space<vmem>>, vector<1x128xf32>
    %c1_8 = arith.constant 1 : index
    %c0_9 = arith.constant 0 : index
    %8 = vector.load %arg5[%c1_8, %c0_9] : memref<3x128xf32, #tpu.memory_space<vmem>>, vector<1x128xf32>
    %c2_10 = arith.constant 2 : index
    %c0_11 = arith.constant 0 : index
    %9 = vector.load %arg5[%c2_10, %c0_11] : memref<3x128xf32, #tpu.memory_space<vmem>>, vector<1x128xf32>
    %c0_12 = arith.constant 0 : index
    %c0_13 = arith.constant 0 : index
    %10 = vector.load %arg2[%c0_12, %c0_13] : memref<8x1024xf32, #tpu.memory_space<vmem>>, vector<8x1024xf32>
    %11 = arith.truncf %10 : vector<8x1024xf32> to vector<8x1024xbf16>
    %c0_14 = arith.constant 0 : index
    %c0_15 = arith.constant 0 : index
    %12 = vector.load %arg3[%c0_14, %c0_15] : memref<1024x128xbf16, #tpu.memory_space<vmem>>, vector<1024x128xbf16>
    %cst = arith.constant dense<0.000000e+00> : vector<8x128xf32>
    %13 = tpu.matmul %11, %12, %cst {dimension_numbers = #tpu.dot_dimension_numbers<[1], [0], [0], [1], [0, 0, 1, 1], [], []>} : vector<8x1024xbf16>, vector<1024x128xbf16>, vector<8x128xf32> -> vector<8x128xf32>
    %14 = vector.broadcast %4 : vector<1x128xf32> to vector<8x128xf32>
    %15 = arith.addf %13, %14 : vector<8x128xf32>
    %cst_16 = arith.constant 0.000000e+00 : f32
    %16 = vector.broadcast %cst_16 : f32 to vector<8x128xf32>
    %17 = arith.cmpf ogt, %15, %16 : vector<8x128xf32>
    %18 = vector.broadcast %0 : f32 to vector<8x128xf32>
    %19 = arith.mulf %18, %15 : vector<8x128xf32>
    %20 = arith.select %17, %15, %19 : vector<8x128xi1>, vector<8x128xf32>
    %21 = vector.broadcast %5 : vector<1x128xf32> to vector<8x128xf32>
    %22 = arith.mulf %20, %21 : vector<8x128xf32>
    %cst_17 = arith.constant dense<0.000000e+00> : vector<8xf32>
    %23 = vector.multi_reduction <add>, %22, %cst_17 [1] : vector<8x128xf32> to vector<8xf32>
    %24 = vector.shape_cast %23 : vector<8xf32> to vector<8x1xf32>
    %25 = vector.broadcast %2 : f32 to vector<8x1xf32>
    %26 = arith.addf %24, %25 : vector<8x1xf32>
    %27 = vector.broadcast %6 : vector<1x128xf32> to vector<8x128xf32>
    %28 = arith.mulf %20, %27 : vector<8x128xf32>
    %cst_18 = arith.constant dense<0.000000e+00> : vector<8xf32>
    %29 = vector.multi_reduction <add>, %28, %cst_18 [1] : vector<8x128xf32> to vector<8xf32>
    %30 = vector.shape_cast %29 : vector<8xf32> to vector<8x1xf32>
    %31 = vector.broadcast %3 : f32 to vector<8x1xf32>
    %32 = arith.addf %30, %31 : vector<8x1xf32>
    %cst_19 = arith.constant 0.000000e+00 : f32
    %33 = vector.broadcast %cst_19 : f32 to vector<8x1xf32>
    %34 = arith.cmpf ogt, %26, %33 : vector<8x1xf32>
    %35 = vector.broadcast %1 : f32 to vector<8x1xf32>
    %36 = arith.mulf %35, %26 : vector<8x1xf32>
    %37 = arith.select %34, %26, %36 : vector<8x1xi1>, vector<8x1xf32>
    %cst_20 = arith.constant 0.000000e+00 : f32
    %38 = vector.broadcast %cst_20 : f32 to vector<8x1xf32>
    %39 = arith.cmpf ogt, %32, %38 : vector<8x1xf32>
    %40 = vector.broadcast %1 : f32 to vector<8x1xf32>
    %41 = arith.mulf %40, %32 : vector<8x1xf32>
    %42 = arith.select %39, %32, %41 : vector<8x1xi1>, vector<8x1xf32>
    %43 = vector.broadcast %37 : vector<8x1xf32> to vector<8x128xf32>
    %44 = vector.broadcast %8 : vector<1x128xf32> to vector<8x128xf32>
    %45 = arith.mulf %43, %44 : vector<8x128xf32>
    %46 = vector.broadcast %42 : vector<8x1xf32> to vector<8x128xf32>
    %47 = vector.broadcast %9 : vector<1x128xf32> to vector<8x128xf32>
    %48 = arith.mulf %46, %47 : vector<8x128xf32>
    %49 = arith.addf %45, %48 : vector<8x128xf32>
    %50 = vector.broadcast %7 : vector<1x128xf32> to vector<8x128xf32>
    %51 = arith.addf %49, %50 : vector<8x128xf32>
    %cst_21 = arith.constant dense<0xFF800000> : vector<8xf32>
    %52 = vector.multi_reduction <maximumf>, %51, %cst_21 [1] : vector<8x128xf32> to vector<8xf32>
    %53 = vector.shape_cast %52 : vector<8xf32> to vector<8x1xf32>
    %54 = vector.broadcast %53 : vector<8x1xf32> to vector<8x128xf32>
    %55 = arith.subf %51, %54 : vector<8x128xf32>
    %56 = math.exp %55 : vector<8x128xf32>
    %cst_22 = arith.constant dense<0.000000e+00> : vector<8xf32>
    %57 = vector.multi_reduction <add>, %56, %cst_22 [1] : vector<8x128xf32> to vector<8xf32>
    %58 = vector.shape_cast %57 : vector<8xf32> to vector<8x1xf32>
    %59 = math.log %58 : vector<8x1xf32>
    %60 = vector.broadcast %59 : vector<8x1xf32> to vector<8x128xf32>
    %61 = arith.subf %55, %60 : vector<8x128xf32>
    %c0_23 = arith.constant 0 : index
    %c0_24 = arith.constant 0 : index
    %62 = vector.load %arg6[%c0_23, %c0_24] : memref<8x128xf32, #tpu.memory_space<vmem>>, vector<8x128xf32>
    tpu.vector_store %arg6[%c0_23, %c0_24], %61 {strides = array<i32>} : memref<8x128xf32, #tpu.memory_space<vmem>>, vector<8x128xf32>,
    return
  }
  func.func @transform_0(%arg0: i32, %arg1: memref<4xf32, #tpu.memory_space<smem>>) -> (i32, i32) {
    %c0_i32 = arith.constant 0 : i32
    %c0_i32_0 = arith.constant 0 : i32
    return %arg0, %c0_i32 : i32, i32
  }
  func.func @transform_1(%arg0: i32, %arg1: memref<4xf32, #tpu.memory_space<smem>>) -> (i32, i32) {
    %c0_i32 = arith.constant 0 : i32
    %c0_i32_0 = arith.constant 0 : i32
    %c0_i32_1 = arith.constant 0 : i32
    return %c0_i32, %c0_i32_0 : i32, i32
  }
  func.func @transform_2(%arg0: i32, %arg1: memref<4xf32, #tpu.memory_space<smem>>) -> (i32, i32) {
    %c0_i32 = arith.constant 0 : i32
    %c0_i32_0 = arith.constant 0 : i32
    %c0_i32_1 = arith.constant 0 : i32
    return %c0_i32, %c0_i32_0 : i32, i32
  }
  func.func @transform_3(%arg0: i32, %arg1: memref<4xf32, #tpu.memory_space<smem>>) -> (i32, i32) {
    %c0_i32 = arith.constant 0 : i32
    %c0_i32_0 = arith.constant 0 : i32
    %c0_i32_1 = arith.constant 0 : i32
    return %c0_i32, %c0_i32_0 : i32, i32
  }
  func.func @transform_4(%arg0: i32, %arg1: memref<4xf32, #tpu.memory_space<smem>>) -> (i32, i32) {
    %c0_i32 = arith.constant 0 : i32
    %c0_i32_0 = arith.constant 0 : i32
    return %arg0, %c0_i32 : i32, i32
  }
}

module attributes {stable_mosaic.version = 11 : i64} {
  func.func @classification_net_kernel(%arg0: i32, %arg1: memref<4xf32, #tpu.memory_space<smem>>, %arg2: memref<8x1024xf32, #tpu.memory_space<vmem>>, %arg3: memref<1024x128xbf16, #tpu.memory_space<vmem>>, %arg4: memref<3x128xf32, #tpu.memory_space<vmem>>, %arg5: memref<3x128xf32, #tpu.memory_space<vmem>>, %arg6: memref<8x128xf32, #tpu.memory_space<vmem>>) attributes {dimension_semantics = [#tpu.dimension_semantics<parallel>], iteration_bounds = array<i64: 1>, scalar_prefetch = 1 : i64, scratch_operands = 0 : i64, tpu.core_type = #tpu.core_type<tc>, window_params = [{transform_indices = @transform_0, window_bounds = array<i64: 8, 1024>}, {pipeline_mode = #tpu.pipeline_mode<synchronous>, transform_indices = @transform_1, window_bounds = array<i64: 1024, 128>}, {pipeline_mode = #tpu.pipeline_mode<synchronous>, transform_indices = @transform_2, window_bounds = array<i64: 3, 128>}, {pipeline_mode = #tpu.pipeline_mode<synchronous>, transform_indices = @transform_3, window_bounds = array<i64: 3, 128>}, {transform_indices = @transform_4, window_bounds = array<i64: 8, 128>}]} {
    %c0 = arith.constant 0 : index
    %0 = memref.load %arg1[%c0] : memref<4xf32, #tpu.memory_space<smem>>
    %c1 = arith.constant 1 : index
    %1 = memref.load %arg1[%c1] : memref<4xf32, #tpu.memory_space<smem>>
    %c2 = arith.constant 2 : index
    %2 = memref.load %arg1[%c2] : memref<4xf32, #tpu.memory_space<smem>>
    %c3 = arith.constant 3 : index
    %3 = memref.load %arg1[%c3] : memref<4xf32, #tpu.memory_space<smem>>
    %c0_0 = arith.constant 0 : index
    %c0_1 = arith.constant 0 : index
    %4 = vector.load %arg4[%c0_0, %c0_1] : memref<3x128xf32, #tpu.memory_space<vmem>>, vector<1x128xf32>
    %c1_2 = arith.constant 1 : index
    %c0_3 = arith.constant 0 : index
    %5 = vector.load %arg4[%c1_2, %c0_3] : memref<3x128xf32, #tpu.memory_space<vmem>>, vector<1x128xf32>
    %c2_4 = arith.constant 2 : index
    %c0_5 = arith.constant 0 : index
    %6 = vector.load %arg4[%c2_4, %c0_5] : memref<3x128xf32, #tpu.memory_space<vmem>>, vector<1x128xf32>
    %c0_6 = arith.constant 0 : index
    %c0_7 = arith.constant 0 : index
    %7 = vector.load %arg5[%c0_6, %c0_7] : memref<3x128xf32, #tpu.memory_space<vmem>>, vector<1x128xf32>
    %c1_8 = arith.constant 1 : index
    %c0_9 = arith.constant 0 : index
    %8 = vector.load %arg5[%c1_8, %c0_9] : memref<3x128xf32, #tpu.memory_space<vmem>>, vector<1x128xf32>
    %c2_10 = arith.constant 2 : index
    %c0_11 = arith.constant 0 : index
    %9 = vector.load %arg5[%c2_10, %c0_11] : memref<3x128xf32, #tpu.memory_space<vmem>>, vector<1x128xf32>
    %c0_12 = arith.constant 0 : index
    %c0_13 = arith.constant 0 : index
    %10 = vector.load %arg2[%c0_12, %c0_13] : memref<8x1024xf32, #tpu.memory_space<vmem>>, vector<8x1024xf32>
    %11 = arith.truncf %10 : vector<8x1024xf32> to vector<8x1024xbf16>
    %c0_14 = arith.constant 0 : index
    %c0_15 = arith.constant 0 : index
    %12 = vector.load %arg3[%c0_14, %c0_15] : memref<1024x128xbf16, #tpu.memory_space<vmem>>, vector<1024x128xbf16>
    %cst = arith.constant dense<0.000000e+00> : vector<8x128xf32>
    %13 = tpu.matmul %11, %12, %cst {dimension_numbers = #tpu.dot_dimension_numbers<[1], [0], [0], [1], [0, 0, 1, 1], [], []>} : vector<8x1024xbf16>, vector<1024x128xbf16>, vector<8x128xf32> -> vector<8x128xf32>
    %14 = vector.broadcast %4 : vector<1x128xf32> to vector<8x128xf32>
    %15 = arith.addf %13, %14 : vector<8x128xf32>
    %cst_16 = arith.constant 0.000000e+00 : f32
    %16 = vector.broadcast %cst_16 : f32 to vector<8x128xf32>
    %17 = arith.cmpf ogt, %15, %16 : vector<8x128xf32>
    %18 = vector.broadcast %0 : f32 to vector<8x128xf32>
    %19 = arith.mulf %18, %15 : vector<8x128xf32>
    %20 = arith.select %17, %15, %19 : vector<8x128xi1>, vector<8x128xf32>
    %21 = vector.broadcast %5 : vector<1x128xf32> to vector<8x128xf32>
    %22 = arith.mulf %20, %21 : vector<8x128xf32>
    %cst_17 = arith.constant dense<0.000000e+00> : vector<8xf32>
    %23 = vector.multi_reduction <add>, %22, %cst_17 [1] : vector<8x128xf32> to vector<8xf32>
    %24 = vector.shape_cast %23 : vector<8xf32> to vector<8x1xf32>
    %25 = vector.broadcast %2 : f32 to vector<8x1xf32>
    %26 = arith.addf %24, %25 : vector<8x1xf32>
    %27 = vector.broadcast %6 : vector<1x128xf32> to vector<8x128xf32>
    %28 = arith.mulf %20, %27 : vector<8x128xf32>
    %cst_18 = arith.constant dense<0.000000e+00> : vector<8xf32>
    %29 = vector.multi_reduction <add>, %28, %cst_18 [1] : vector<8x128xf32> to vector<8xf32>
    %30 = vector.shape_cast %29 : vector<8xf32> to vector<8x1xf32>
    %31 = vector.broadcast %3 : f32 to vector<8x1xf32>
    %32 = arith.addf %30, %31 : vector<8x1xf32>
    %cst_19 = arith.constant 0.000000e+00 : f32
    %33 = vector.broadcast %cst_19 : f32 to vector<8x1xf32>
    %34 = arith.cmpf ogt, %26, %33 : vector<8x1xf32>
    %35 = vector.broadcast %1 : f32 to vector<8x1xf32>
    %36 = arith.mulf %35, %26 : vector<8x1xf32>
    %37 = arith.select %34, %26, %36 : vector<8x1xi1>, vector<8x1xf32>
    %cst_20 = arith.constant 0.000000e+00 : f32
    %38 = vector.broadcast %cst_20 : f32 to vector<8x1xf32>
    %39 = arith.cmpf ogt, %32, %38 : vector<8x1xf32>
    %40 = vector.broadcast %1 : f32 to vector<8x1xf32>
    %41 = arith.mulf %40, %32 : vector<8x1xf32>
    %42 = arith.select %39, %32, %41 : vector<8x1xi1>, vector<8x1xf32>
    %43 = vector.broadcast %37 : vector<8x1xf32> to vector<8x128xf32>
    %44 = vector.broadcast %8 : vector<1x128xf32> to vector<8x128xf32>
    %45 = arith.mulf %43, %44 : vector<8x128xf32>
    %46 = vector.broadcast %42 : vector<8x1xf32> to vector<8x128xf32>
    %47 = vector.broadcast %9 : vector<1x128xf32> to vector<8x128xf32>
    %48 = arith.mulf %46, %47 : vector<8x128xf32>
    %49 = arith.addf %45, %48 : vector<8x128xf32>
    %50 = vector.broadcast %7 : vector<1x128xf32> to vector<8x128xf32>
    %51 = arith.addf %49, %50 : vector<8x128xf32>
    %cst_21 = arith.constant dense<0xFF800000> : vector<8xf32>
    %52 = vector.multi_reduction <maximumf>, %51, %cst_21 [1] : vector<8x128xf32> to vector<8xf32>
    %53 = vector.shape_cast %52 : vector<8xf32> to vector<8x1xf32>
    %54 = vector.broadcast %53 : vector<8x1xf32> to vector<8x128xf32>
    %55 = arith.subf %51, %54 : vector<8x128xf32>
    %56 = math.exp %55 : vector<8x128xf32>
    %cst_22 = arith.constant dense<0.000000e+00> : vector<8xf32>
    %57 = vector.multi_reduction <add>, %56, %cst_22 [1] : vector<8x128xf32> to vector<8xf32>
    %58 = vector.shape_cast %57 : vector<8xf32> to vector<8x1xf32>
    %59 = math.log %58 : vector<8x1xf32>
    %60 = vector.broadcast %59 : vector<8x1xf32> to vector<8x128xf32>
    %61 = arith.subf %55, %60 : vector<8x128xf32>
    %c0_23 = arith.constant 0 : index
    %c0_24 = arith.constant 0 : index
    %62 = vector.load %arg6[%c0_23, %c0_24] : memref<8x128xf32, #tpu.memory_space<vmem>>, vector<8x128xf32>
    tpu.vector_store %arg6[%c0_23, %c0_24], %61 {strides = array<i32>} : memref<8x128xf32, #tpu.memory_space<vmem>>, vector<8x128xf32>,
    return
  }
  func.func @transform_0(%arg0: i32, %arg1: memref<4xf32, #tpu.memory_space<smem>>) -> (i32, i32) {
    %c0_i32 = arith.constant 0 : i32
    %c0_i32_0 = arith.constant 0 : i32
    return %arg0, %c0_i32 : i32, i32
  }
  func.func @transform_1(%arg0: i32, %arg1: memref<4xf32, #tpu.memory_space<smem>>) -> (i32, i32) {
    %c0_i32 = arith.constant 0 : i32
    %c0_i32_0 = arith.constant 0 : i32
    %c0_i32_1 = arith.constant 0 : i32
    return %c0_i32, %c0_i32_0 : i32, i32
  }
  func.func @transform_2(%arg0: i32, %arg1: memref<4xf32, #tpu.memory_space<smem>>) -> (i32, i32) {
    %c0_i32 = arith.constant 0 : i32
    %c0_i32_0 = arith.constant 0 : i32
    %c0_i32_1 = arith.constant 0 : i32
    return %c0_i32, %c0_i32_0 : i32, i32
  }
  func.func @transform_3(%arg0: i32, %arg1: memref<4xf32, #tpu.memory_space<smem>>) -> (i32, i32) {
    %c0_i32 = arith.constant 0 : i32
    %c0_i32_0 = arith.constant 0 : i32
    %c0_i32_1 = arith.constant 0 : i32
    return %c0_i32, %c0_i32_0 : i32, i32
  }
  func.func @transform_4(%arg0: i32, %arg1: memref<4xf32, #tpu.memory_space<smem>>) -> (i32, i32) {
    %c0_i32 = arith.constant 0 : i32
    %c0_i32_0 = arith.constant 0 : i32
    return %arg0, %c0_i32 : i32, i32
  }
}

</mosaic_0001>

<bundles_post_ra>
// kernel: tpu_custom_call.1
= control target key start
LH: loop header
LB: loop body
LE: loop exit
PB: predicated region body
PF: predicated region fallthrough
CT: control target
= control target key end

     0   :  { %s1369_s0 = inlined_call_operand.hbm [shape: f32[4], index: 0, kind: input, shape index: {}]   ;;  %s1370_s1 = inlined_call_operand.hbm [shape: f32[2,1024], index: 1, kind: input, shape index: {}]   ;;  %s1371_s2 = inlined_call_operand.hbm [shape: bf16[1024,128], index: 2, kind: input, shape index: {}]   ;;  %s1372_s3 = inlined_call_operand.vmem [shape: f32[3,128], index: 3, kind: input, shape index: {}]   ;;  %s1373_s4 = inlined_call_operand.vmem [shape: f32[3,128], index: 4, kind: input, shape index: {}]   ;;  %s1374_s5 = inlined_call_operand.hbm [shape: f32[2,128], index: 5, kind: output, shape index: {}]  }
   0x1   :  { %s1168_s20 = scalar_lea.hbm %s1369_s0, 16 }
   0x2   :  { %p1169_p0 = scmp.ne.s32.totalorder %s1369_s0, %s1168_s20  ;;  %p1172_p1 = scmp.lt.u32.totalorder %s1168_s20, %s1369_s0 }
   0x4   :  { %p1174_p2 = pnand %p1172_p1, %p1169_p0 }
   0x6   :  { %1177 = shalt.err (!%p1174_p2)  }
   0x7   :  { %s1252_s25 = smov [#allocation3]  }
   0x8   :  { %11 = dma.hbm_to_smem %s1369_s0, 16, %s1252_s25, [#allocation2] }
   0x9   :  { %1244 = dma.done.wait [#allocation2], 16 }
   0xa   :  { %1245 = vsyncadd [#allocation2], 4294967280 }
   0xb   :  { %13 = sfence }
   0xc   :  { %14 = vsyncpa [#allocation5], 0 }
   0xd   :  { %15 = vsyncpa [#allocation8], 0 }
   0xe   :  { %16 = vsyncpa [#allocation6], 0 }
   0xf   :  { %21 = vsyncadd [#allocation5], 768  ;;  %s1253_s28 = smov [#allocation4]   ;;  %s1178_s7 = scalar_lea.hbm %s1370_s1, 256 }
  0x10   :  { %s22_s29 = sshll.u32 %s1253_s28, 4  ;;  %p1179_p3 = scmp.ne.s32.totalorder %s1370_s1, %s1178_s7  ;;  %s23_s29 = int_to_ptr.vmem [resolvable:$true] %s22_s29 }
  0x11   :  { %p1182_p4 = scmp.lt.u32.totalorder %s1178_s7, %s1370_s1 }
  0x13   :  { %p1184_p5 = pnand %p1182_p4, %p1179_p3 }
  0x15   :  { %1187 = shalt.err (!%p1184_p5)
}
  0x16   :  { %s1188_s11 = scalar_lea.vmem %s23_s29, 256  ;;  %s1192_s12 = scalar_lea.vmem %s23_s29, 1024 }
  0x17   :  { %p1189_p6 = scmp.ne.s32.totalorder %s23_s29, %s1188_s11  ;;  %p1193_p7 = scmp.lt.s32.totalorder %s23_s29, %s23_s29 }
  0x18   :  { %p1194_p8 = scmp.lt.s32.totalorder %s1192_s12, %s1188_s11 }
  0x1a   :  { %p1195_p9 = por %p1194_p8, %p1193_p7 }
  0x1c   :  { %p1196_p10 = pnand %p1195_p9, %p1189_p6 }
  0x1e   :  { %1199 = shalt.err (!%p1196_p10)
}
  0x1f   :  { %s1254_s13 = smov 256   ;;  %s1255_s14 = smov 16  }
  0x20   :  { %28 = dma.hbm_to_vmem [thread:$0]  %s1370_s1, 256, %s23_s29, [#allocation5], %s1254_s13, %s1254_s13, %s1255_s14  }
  0x21   :  { %s1256_s17 = smov [#allocation7]   ;;  %s1200_s21 = scalar_lea.hbm %s1371_s2, 8192 }
  0x22   :  { %s34_s18 = sshll.u32 %s1256_s17, 4  ;;  %p1201_p11 = scmp.ne.s32.totalorder %s1371_s2, %s1200_s21  ;;  %s35_s18 = int_to_ptr.vmem [resolvable:$true] %s34_s18 }
  0x23   :  { %p1204_p12 = scmp.lt.u32.totalorder %s1200_s21, %s1371_s2 }
  0x25   :  { %p1206_p13 = pnand %p1204_p12, %p1201_p11 }
  0x27   :  { %1209 = shalt.err (!%p1206_p13)
}
  0x28   :  { %s1210_s26 = scalar_lea.vmem %s35_s18, 8192  ;;  %p1215_p1 = scmp.lt.s32.totalorder %s35_s18, %s35_s18 }
  0x29   :  { %p1211_p0 = scmp.ne.s32.totalorder %s35_s18, %s1210_s26  ;;  %p1216_p2 = scmp.lt.s32.totalorder %s1210_s26, %s1210_s26 }
  0x2b   :  { %p1217_p3 = por %p1216_p2, %p1215_p1 }
  0x2d   :  { %p1218_p4 = pnand %p1217_p3, %p1211_p0 }
  0x2f   :  { %1221 = shalt.err (!%p1218_p4)
}
  0x30   :  { %s1257_s1 = smov 64   ;;  %s1258_s27 = smov 4  }
  0x31   :  { %40 = dma.hbm_to_vmem [thread:$0]  %s1371_s2, 8192, %s35_s18, [#allocation8], %s1257_s1, %s1257_s1, %s1258_s27  }
  0x32   :  { %1246 = dma.done.wait [#allocation5], 1024  }
  0x33   :  { %1247 = vsyncadd [#allocation5], 4294966272 }
  0x34   :  { %1248 = dma.done.wait [#allocation8], 8192  }
  0x35   :  { %1249 = vsyncadd [#allocation8], 4294959104  ;;  %v1088_v0 = vld [vmem:[#allocation7 + $0x40] sm:$0xff]   ;;  %v1092_v4 = vld [vmem:[#allocation7 + $0x48] sm:$0xff]   ;;  %v1259_v24 = vmov 1983009808   ;;  %v85_v26 = vlaneseq }
  0x36   :  { %v1089_v1 = vld [vmem:[#allocation7 + $0xc0] sm:$0xff]   ;;  %989 = vmatprep.subr.bf16.mxu0 %v1088_v0  ;;  %v1093_v5 = vld [vmem:[#allocation7 + $0xc8] sm:$0xff]   ;;  %v1096_v8 = vld [vmem:[#allocation7 + $0x50] sm:$0xff]   ;;  %v83_v25 = vunpack.c.l.s4 %v1259_v24  ;;  %s52_s6 = sld [smem:[#allocation3]]  ;;  %s917_s0 = sld [smem:[#allocation3 + $0x2]] }
  0x37   :  { %v1090_v2 = vld [vmem:[#allocation7] sm:$0xff]   ;;  %1011 = vmatprep.subr.bf16.mxu1 %v1089_v1  ;;  %v1094_v6 = vld [vmem:[#allocation7 + $0x8] sm:$0xff]   ;;  %v1097_v9 = vld [vmem:[#allocation7 + $0xd0] sm:$0xff]   ;;  %v86_v32 = vshrl.u32 %v85_v26, 7  ;;  %s916_s11 = sld [smem:[#allocation3 + $0x1]]  ;;  %s918_s12 = sld [smem:[#allocation3 + $0x3]] }
  0x38   :  { %v1091_v3 = vld [vmem:[#allocation7 + $0x80] sm:$0xff]   ;;  %990 = vmatpush3.bf16.msra.mxu0 %v1090_v2  ;;  %v1095_v7 = vld [vmem:[#allocation7 + $0x88] sm:$0xff]   ;;  %v1098_v10 = vld [vmem:[#allocation7 + $0x10] sm:$0xff]   ;;  %v84_v31 = vunpack.c.0.s8 %v83_v25 }
  0x39   :  { %1012 = vmatpush3.bf16.msra.mxu1 %v1091_v3  ;;  %991 = vmatprep.subr.bf16.mxu0 %v1092_v4  ;;  %v1099_v11 = vld [vmem:[#allocation7 + $0x90] sm:$0xff]   ;;  %v1100_v12 = vld [vmem:[#allocation7 + $0x58] sm:$0xff]   ;;  %v1104_v16 = vld [vmem:[#allocation7 + $0x60] sm:$0xff]  }
  0x3a   :  { %1013 = vmatprep.subr.bf16.mxu1 %v1093_v5  ;;  %v1101_v13 = vld [vmem:[#allocation7 + $0xd8] sm:$0xff]   ;;  %v1105_v17 = vld [vmem:[#allocation7 + $0xe0] sm:$0xff]   ;;  %v1108_v20 = vld [vmem:[#allocation7 + $0x68] sm:$0xff]   ;;  %v1329_v37 = vsub.s32 %v84_v31, %v86_v32 }
  0x3b   :  { %v1102_v14 = vld [vmem:[#allocation7 + $0x18] sm:$0xff]   ;;  %v1106_v18 = vld [vmem:[#allocation7 + $0x20] sm:$0xff]   ;;  %v1109_v21 = vld [vmem:[#allocation7 + $0xe8] sm:$0xff]  }
  0x3c   :  { %992 = vmatpush3.bf16.msra.mxu0 %v1094_v6  ;;  %v1103_v15 = vld [vmem:[#allocation7 + $0x98] sm:$0xff]   ;;  %v1107_v19 = vld [vmem:[#allocation7 + $0xa0] sm:$0xff]   ;;  %v1110_v22 = vld [vmem:[#allocation7 + $0x28] sm:$0xff]  }
  0x3d   :  { %1014 = vmatpush3.bf16.msra.mxu1 %v1095_v7  ;;  %993 = vmatprep.subr.bf16.mxu0 %v1096_v8  ;;  %v1111_v23 = vld [vmem:[#allocation7 + $0xa8] sm:$0xff]   ;;  %v1112_v27 = vld [vmem:[#allocation7 + $0x70] sm:$0xff]   ;;  %v1116_v33 = vld [vmem:[#allocation7 + $0x78] sm:$0xff]  }
  0x3e   :  { %1015 = vmatprep.subr.bf16.mxu1 %v1097_v9  ;;  %v1113_v28 = vld [vmem:[#allocation7 + $0xf0] sm:$0xff]   ;;  %v1117_v34 = vld [vmem:[#allocation7 + $0xf8] sm:$0xff]   ;;  %v1126_v44 = vld [vmem:[#allocation7 + $0x140] sm:$0xff]  }
  0x3f   :  { %v1114_v29 = vld [vmem:[#allocation7 + $0x30] sm:$0xff]   ;;  %v1118_v35 = vld [vmem:[#allocation7 + $0x38] sm:$0xff]   ;;  %v1127_v47 = vld [vmem:[#allocation7 + $0x1c0] sm:$0xff]  }
  0x40   :  { %994 = vmatpush3.bf16.msra.mxu0 %v1098_v10  ;;  %v1115_v30 = vld [vmem:[#allocation7 + $0xb0] sm:$0xff]   ;;  %v1119_v36 = vld [vmem:[#allocation7 + $0xb8] sm:$0xff]   ;;  %v1128_v50 = vld [vmem:[#allocation7 + $0x100] sm:$0xff]  }
  0x41   :  { %1016 = vmatpush3.bf16.msra.mxu1 %v1099_v11  ;;  %995 = vmatprep.subr.bf16.mxu0 %v1100_v12  ;;  %v1120_v38 = vld [vmem:[#allocation4] ss:$16 sps:$4 sm:$0xff]   ;;  %v1124_v40 = vld [vmem:[#allocation4 + $0x4] ss:$16 sps:$4 sm:$0xff]   ;;  %v1130_v56 = vld [vmem:[#allocation7 + $0x148] sm:$0xff]  }
  0x42   :  { %1017 = vmatprep.subr.bf16.mxu1 %v1101_v13  ;;  %v1122_v39 = vld [vmem:[#allocation4 + $0x20] ss:$16 sps:$4 sm:$0xff]   ;;  %v1125_v41 = vld [vmem:[#allocation4 + $0x24] ss:$16 sps:$4 sm:$0xff]   ;;  %v88_v42 = vrot.slane %v1120_v38, %v1329_v37  ;;  %v95_v45 = vrot.slane %v1124_v40, %v1329_v37  ;;  %v1131_v59 = vld [vmem:[#allocation7 + $0x1c8] sm:$0xff]  }
  0x43   :  { %v102_v43 = vrot.slane %v1122_v39, %v1329_v37  ;;  %v109_v46 = vrot.slane %v1125_v41, %v1329_v37  ;;  %v1129_v53 = vld [vmem:[#allocation7 + $0x180] sm:$0xff]   ;;  %v1132_v60 = vld [vmem:[#allocation7 + $0x108] sm:$0xff]   ;;  %v1134_v62 = vld [vmem:[#allocation7 + $0x150] sm:$0xff]  }
  0x44   :  { %996 = vmatpush3.bf16.msra.mxu0 %v1102_v14  ;;  %v1133_v61 = vld [vmem:[#allocation7 + $0x188] sm:$0xff]   ;;  %v1135_v63 = vld [vmem:[#allocation7 + $0x1d0] sm:$0xff]   ;;  %v1138_v2 = vld [vmem:[#allocation7 + $0x158] sm:$0xff]  }
  0x45   :  { %1018 = vmatpush3.bf16.msra.mxu1 %v1103_v15  ;;  %997 = vmatprep.subr.bf16.mxu0 %v1104_v16  ;;  %v111_v48 = vcombine.high %v88_v42, %v102_v43  ;;  %v110_v49 = vcombine.low %v88_v42, %v102_v43  ;;  %v113_v51 = vcombine.high %v95_v45, %v109_v46  ;;  %v1136_v0 = vld [vmem:[#allocation7 + $0x110] sm:$0xff]   ;;  %v1139_v3 = vld [vmem:[#allocation7 + $0x1d8] sm:$0xff]   ;;  %v1142_v6 = vld [vmem:[#allocation7 + $0x160] sm:$0xff]  }
  0x46   :  { %1019 = vmatprep.subr.bf16.mxu1 %v1105_v17  ;;  %v112_v52 = vcombine.low %v95_v45, %v109_v46  ;;  %v1137_v1 = vld [vmem:[#allocation7 + $0x190] sm:$0xff]   ;;  %v1140_v4 = vld [vmem:[#allocation7 + $0x118] sm:$0xff]   ;;  %v1143_v7 = vld [vmem:[#allocation7 + $0x1e0] sm:$0xff]  }
  0x47   :  { %v159_v54 = vpack.c.bf16 %v111_v48, %v111_v48  ;;  %v158_v55 = vpack.c.bf16 %v110_v49, %v110_v49  ;;  %v161_v57 = vpack.c.bf16 %v113_v51, %v113_v51  ;;  %v1141_v5 = vld [vmem:[#allocation7 + $0x198] sm:$0xff]   ;;  %v1144_v8 = vld [vmem:[#allocation7 + $0x120] sm:$0xff]   ;;  %v1146_v10 = vld [vmem:[#allocation7 + $0x168] sm:$0xff]  }
  0x48   :  { %998 = vmatpush3.bf16.msra.mxu0 %v1106_v18  ;;  %v160_v58 = vpack.c.bf16 %v112_v52, %v112_v52  ;;  %v1145_v9 = vld [vmem:[#allocation7 + $0x1a0] sm:$0xff]   ;;  %v1147_v11 = vld [vmem:[#allocation7 + $0x1e8] sm:$0xff]   ;;  %v1150_v14 = vld [vmem:[#allocation7 + $0x170] sm:$0xff]  }
  0x49   :  { %1020 = vmatpush3.bf16.msra.mxu1 %v1107_v19  ;;  %999 = vmatprep.subr.bf16.mxu0 %v1108_v20  ;;  %v1148_v12 = vld [vmem:[#allocation7 + $0x128] sm:$0xff]   ;;  %v1151_v15 = vld [vmem:[#allocation7 + $0x1f0] sm:$0xff]   ;;  %v1154_v18 = vld [vmem:[#allocation7 + $0x178] sm:$0xff]  }
  0x4a   :  { %1021 = vmatprep.subr.bf16.mxu1 %v1109_v21  ;;  %714 = vmatprep.mubr.bf16.mxu0 %v159_v54  ;;  %v1149_v13 = vld [vmem:[#allocation7 + $0x1a8] sm:$0xff]   ;;  %v1152_v16 = vld [vmem:[#allocation7 + $0x130] sm:$0xff]   ;;  %v1155_v19 = vld [vmem:[#allocation7 + $0x1f8] sm:$0xff]  }
  0x4b   :  { %754 = vmatprep.mubr.bf16.mxu1 %v161_v57  ;;  %v1153_v17 = vld [vmem:[#allocation7 + $0x1b0] sm:$0xff]   ;;  %v1156_v20 = vld [vmem:[#allocation7 + $0x138] sm:$0xff]  }
  0x4c   :  { %1000 = vmatpush3.bf16.msra.mxu0 %v1110_v22  ;;  %v1157_v21 = vld [vmem:[#allocation7 + $0x1b8] sm:$0xff]   ;;  %v919_v41 = vld [vmem:[%s1372_s3] ss:$0 sm:$0xff] }
  0x4d   :  { %1022 = vmatpush3.bf16.msra.mxu1 %v1111_v23  ;;  %1001 = vmatprep.subr.bf16.mxu0 %v1112_v27  ;;  %v1158_v22 = vld [vmem:[#allocation4 + $0x8] ss:$16 sps:$4 sm:$0xff]   ;;  %v1162_v24 = vld [vmem:[#allocation4 + $0xc] ss:$16 sps:$4 sm:$0xff]  }
  0x4e   :  { %1023 = vmatprep.subr.bf16.mxu1 %v1113_v28  ;;  %v1160_v23 = vld [vmem:[#allocation4 + $0x28] ss:$16 sps:$4 sm:$0xff]   ;;  %v1163_v25 = vld [vmem:[#allocation4 + $0x2c] ss:$16 sps:$4 sm:$0xff]   ;;  %v124_v26 = vrot.slane %v1158_v22, %v1329_v37  ;;  %v131_v28 = vrot.slane %v1162_v24, %v1329_v37 }
  0x4f   :  { %v138_v27 = vrot.slane %v1160_v23, %v1329_v37 }
  0x50   :  { %1002 = vmatpush3.bf16.msra.mxu0 %v1114_v29  ;;  %v145_v29 = vrot.slane %v1163_v25, %v1329_v37 }
  0x51   :  { %1024 = vmatpush3.bf16.msra.mxu1 %v1115_v30  ;;  %1003 = vmatprep.subr.bf16.mxu0 %v1116_v33  ;;  %v147_v30 = vcombine.high %v124_v26, %v138_v27  ;;  %v146_v31 = vcombine.low %v124_v26, %v138_v27 }
  0x52   :  { %1025 = vmatprep.subr.bf16.mxu1 %v1117_v34  ;;  %v149_v32 = vcombine.high %v131_v28, %v145_v29  ;;  %v148_v33 = vcombine.low %v131_v28, %v145_v29 }
  0x53   :  { %v163_v34 = vpack.c.bf16 %v147_v30, %v147_v30 }
  0x54   :  { %1004 = vmatpush3.bf16.msra.mxu0 %v1118_v35  ;;  %v162_v35 = vpack.c.bf16 %v146_v31, %v146_v31  ;;  %v164_v38 = vpack.c.bf16 %v148_v33, %v148_v33 }
  0x55   :  { %1026 = vmatpush3.bf16.msra.mxu1 %v1119_v36  ;;  %1033 = vmatprep.subr.bf16.mxu0 %v1126_v44  ;;  %v165_v36 = vpack.c.bf16 %v149_v32, %v149_v32 }
  0x56   :  { %1055 = vmatprep.subr.bf16.mxu1 %v1127_v47 }
  0x57   :  { %715 = vmatmul.mubr.bf16.vlgmr.msra.gmra.mrb[0].mxu0 %v158_v55 }
  0x58   :  { %755 = vmatmul.mubr.bf16.vlgmr.msra.gmra.mrb[0].mxu1 %v160_v58  ;;  %1034 = vmatpush3.bf16.msra.mxu0 %v1128_v50 }
  0x59   :  { %1056 = vmatpush3.bf16.msra.mxu1 %v1129_v53  ;;  %1035 = vmatprep.subr.bf16.mxu0 %v1130_v56 }
  0x5a   :  { %1057 = vmatprep.subr.bf16.mxu1 %v1131_v59  ;;  %794 = vmatprep.mubr.bf16.mxu0 %v163_v34 }
  0x5b   :  { %834 = vmatprep.mubr.bf16.mxu1 %v165_v36 }
  0x5c   :  { %1036 = vmatpush3.bf16.msra.mxu0 %v1132_v60 }
  0x5d   :  { %1058 = vmatpush3.bf16.msra.mxu1 %v1133_v61  ;;  %1037 = vmatprep.subr.bf16.mxu0 %v1134_v62  ;;  %v843_v62 = vstv %s52_s6 }
  0x5e   :  { %1059 = vmatprep.subr.bf16.mxu1 %v1135_v63 }
  0x60   :  { %1038 = vmatpush3.bf16.msra.mxu0 %v1136_v0  ;;  %v984_v0 = vld [vmem:[%s1372_s3 + $0x1] ss:$0 sm:$0xff] }
  0x61   :  { %1060 = vmatpush3.bf16.msra.mxu1 %v1137_v1  ;;  %1039 = vmatprep.subr.bf16.mxu0 %v1138_v2 }
  0x62   :  { %1061 = vmatprep.subr.bf16.mxu1 %v1139_v3 }
  0x64   :  { %1040 = vmatpush3.bf16.msra.mxu0 %v1140_v4  ;;  %v985_v4 = vld [vmem:[%s1372_s3 + $0x2] ss:$0 sm:$0xff] }
  0x65   :  { %1062 = vmatpush3.bf16.msra.mxu1 %v1141_v5  ;;  %1041 = vmatprep.subr.bf16.mxu0 %v1142_v6  ;;  %v853_v6 = vstv %s917_s0 }
  0x66   :  { %1063 = vmatprep.subr.bf16.mxu1 %v1143_v7  ;;  %v865_v7 = vstv %s916_s11 }
  0x68   :  { %1042 = vmatpush3.bf16.msra.mxu0 %v1144_v8 }
  0x69   :  { %1064 = vmatpush3.bf16.msra.mxu1 %v1145_v9  ;;  %1043 = vmatprep.subr.bf16.mxu0 %v1146_v10  ;;  %v862_v10 = vstv %s918_s12 }
  0x6a   :  { %1065 = vmatprep.subr.bf16.mxu1 %v1147_v11 }
  0x6c   :  { %1044 = vmatpush3.bf16.msra.mxu0 %v1148_v12 }
  0x6d   :  { %1066 = vmatpush3.bf16.msra.mxu1 %v1149_v13  ;;  %1045 = vmatprep.subr.bf16.mxu0 %v1150_v14 }
  0x6e   :  { %1067 = vmatprep.subr.bf16.mxu1 %v1151_v15 }
  0x70   :  { %1046 = vmatpush3.bf16.msra.mxu0 %v1152_v16  ;;  %v986_v16 = vld [vmem:[%s1373_s4 + $0x1] ss:$0 sm:$0xff] }
  0x71   :  { %1068 = vmatpush3.bf16.msra.mxu1 %v1153_v17  ;;  %1047 = vmatprep.subr.bf16.mxu0 %v1154_v18  ;;  %v987_v17 = vld [vmem:[%s1373_s4 + $0x2] ss:$0 sm:$0xff] }
  0x72   :  { %1069 = vmatprep.subr.bf16.mxu1 %v1155_v19 }
  0x74   :  { %1048 = vmatpush3.bf16.msra.mxu0 %v1156_v20 }
  0x75   :  { %1070 = vmatpush3.bf16.msra.mxu1 %v1157_v21  ;;  %v988_v21 = vld [vmem:[%s1373_s4] ss:$0 sm:$0xff] }
  0x77   :  { %795 = vmatmul.mubr.bf16.vlgmr.msra.gmra.mrb[4].mxu0 %v162_v35 }
  0x78   :  { %835 = vmatmul.mubr.bf16.vlgmr.msra.gmra.mrb[4].mxu1 %v164_v38 }
 0x12a   :  { %v1005_v39 = vpop.f32.mrb[0].mxu0 }
 0x12b   :  { %v1027_v40 = vpop.f32.mrb[0].mxu1  ;;  %v1006_v37 = vpop.f32.mrb[1].mxu0 }
 0x12c   :  { %v1007_v42 = vadd.f32 %v1006_v37, %v1005_v39  ;;  %v1028_v43 = vpop.f32.mrb[1].mxu1  ;;  %v1008_v44 = vpop.f32.mrb[2].mxu0 }
 0x12d   :  { %v1029_v45 = vadd.f32 %v1028_v43, %v1027_v40  ;;  %v1030_v46 = vpop.f32.mrb[2].mxu1  ;;  %v1009_v47 = vpop.f32.mrb[3].mxu0 }
 0x12e   :  { %v717_v48 = vadd.f32 %v1007_v42, %v919_v41  ;;  %v1031_v49 = vpop.f32.mrb[3].mxu1 }
 0x130   :  { %v757_v50 = vadd.f32 %v1029_v45, %v717_v48 }
 0x14a   :  { %v1049_v51 = vpop.f32.mrb[4].mxu0 }
 0x14b   :  { %v1071_v52 = vpop.f32.mrb[4].mxu1  ;;  %v1050_v53 = vpop.f32.mrb[5].mxu0 }
 0x14c   :  { %v1051_v54 = vadd.f32 %v1050_v53, %v1049_v51  ;;  %v1072_v55 = vpop.f32.mrb[5].mxu1  ;;  %v1052_v56 = vpop.f32.mrb[6].mxu0 }
 0x14d   :  { %v1073_v57 = vadd.f32 %v1072_v55, %v1071_v52  ;;  %v1074_v58 = vpop.f32.mrb[6].mxu1  ;;  %v1053_v59 = vpop.f32.mrb[7].mxu0 }
 0x14e   :  { %v797_v60 = vadd.f32 %v1051_v54, %v757_v50  ;;  %v1075_v61 = vpop.f32.mrb[7].mxu1 }
 0x150   :  { %v837_v63 = vadd.f32 %v1073_v57, %v797_v60 }
 0x152   :  { %vm842_vm0 = vcmp.gt.f32.partialorder %v837_v63, 0.0  ;;  %v844_v1 = vmul.f32 %v843_v62, %v837_v63 }
 0x154   :  { %v845_v2 = vsel %vm842_vm0, %v837_v63, %v844_v1 }
 0x155   :  { %v850_v3 = vmul.f32 %v984_v0, %v845_v2  ;;  %v859_v5 = vmul.f32 %v985_v4, %v845_v2 }
 0x157   :  { %851 = vadd.xlane.f32.xlu0 %v850_v3 }
 0x15b   :  { %860 = vadd.xlane.f32.xlu0 %v859_v5 }
 0x1e4   :  { %v852_v8 = vpop.xlane.xlu0 %851 }
 0x1e5   :  { %v854_v9 = vadd.f32 %v853_v6, %v852_v8 }
 0x1e7   :  { %v866_v11 = vmul.f32 %v865_v7, %v854_v9  ;;  %vm864_vm1 = vcmp.gt.f32.partialorder %v854_v9, 0.0 }
 0x1e8   :  { %v861_v12 = vpop.xlane.xlu0 %860 }
 0x1e9   :  { %v863_v13 = vadd.f32 %v862_v10, %v861_v12  ;;  %v867_v14 = vsel %vm864_vm1, %v854_v9, %v866_v11 }
 0x1ea   :  { %v875_v19 = vmul.f32 %v986_v16, %v867_v14 }
 0x1eb   :  { %vm868_vm2 = vcmp.gt.f32.partialorder %v863_v13, 0.0  ;;  %v869_v15 = vmul.f32 %v865_v7, %v863_v13 }
 0x1ed   :  { %v870_v18 = vsel %vm868_vm2, %v863_v13, %v869_v15 }
 0x1ee   :  { %v880_v20 = vmul.f32 %v987_v17, %v870_v18 }
 0x1f0   :  { %v881_v22 = vadd.f32 %v880_v20, %v875_v19 }
 0x1f2   :  { %v886_v23 = vadd.f32 %v988_v21, %v881_v22 }
 0x1f4   :  { %887 = vmax.xlane.f32.xlu1 %v886_v23 }
 0x281   :  { %v888_v24 = vpop.xlane.xlu1 %887 }
 0x282   :  { %v889_v25 = vsub.f32 %v886_v23, %v888_v24 }
 0x284   :  { %v890_v26 = vmul.f32 1.442695, %v889_v25 }
 0x286   :  { %1164 = vpow2.f32 %v890_v26 }
 0x290   :  { %v1165_v27 = vpop.eup %1164 }
 0x291   :  { %892 = vadd.xlane.f32.xlu1 %v1165_v27 }
 0x31e   :  { %v893_v28 = vpop.xlane.xlu1 %892 }
 0x31f   :  { %1166 = vlog2.f32 %v893_v28 }
 0x329   :  { %v1167_v29 = vpop.eup %1166 }
 0x32a   :  { %v895_v30 = vmul.f32 0.6931472, %v1167_v29 }
 0x32c   :  { %v896_v31 = vsub.f32 %v889_v25, %v895_v30 }
 0x32e   :  { %897 = vst [vmem:[#allocation9] sm:$0xff] %v896_v31 }
 0x32f   :  { %902 = vsyncadd [#allocation6], 96  ;;  %s1260_s18 = smov [#allocation9]  }
 0x330   :  { %s903_s19 = sshll.u32 %s1260_s18, 4  ;;  %s904_s19 = int_to_ptr.vmem [resolvable:$true] %s903_s19 }
 0x331   :  { %s1222_s4 = scalar_lea.vmem %s904_s19, 32  ;;  %s1226_s20 = scalar_lea.vmem %s904_s19, 128 }
 0x332   :  { %p1223_p5 = scmp.ne.s32.totalorder %s904_s19, %s1222_s4  ;;  %p1227_p6 = scmp.lt.s32.totalorder %s904_s19, %s904_s19 }
 0x333   :  { %p1228_p7 = scmp.lt.s32.totalorder %s1226_s20, %s1222_s4 }
 0x335   :  { %p1229_p8 = por %p1228_p7, %p1227_p6 }
 0x337   :  { %p1230_p9 = pnand %p1229_p8, %p1223_p5 }
 0x339   :  { %1233 = shalt.err (!%p1230_p9)
}
 0x33a   :  { %s1234_s23 = scalar_lea.hbm %s1374_s5, 32 }
 0x33b   :  { %p1235_p10 = scmp.ne.s32.totalorder %s1374_s5, %s1234_s23  ;;  %p1238_p11 = scmp.lt.u32.totalorder %s1234_s23, %s1374_s5 }
 0x33d   :  { %p1240_p12 = pnand %p1238_p11, %p1235_p10 }
 0x33f   :  { %1243 = shalt.err (!%p1240_p12)
}
 0x340   :  { %s1261_s27 = smov 32   ;;  %s1262_s28 = smov 2  }
 0x341   :  { %909 = dma.vmem_to_hbm [thread:$0]  %s904_s19, 32, %s1374_s5, [#allocation6], %s1261_s27, %s1261_s27, %s1262_s28  }
 0x342   :  { %1250 = dma.done.wait [#allocation6], 128  }
 0x343   :  { %1251 = vsyncadd [#allocation6], 4294967168 }
 0x344   :  { %913 = vsyncpa [#allocation5], 1 }
 0x345   :  { %914 = vsyncpa [#allocation8], 1 }
 0x346   :  { %915 = vsyncpa [#allocation6], 1 }

// kernel: tpu_custom_call.1
= control target key start
LH: loop header
LB: loop body
LE: loop exit
PB: predicated region body
PF: predicated region fallthrough
CT: control target
= control target key end

     0   :  { %s1369_s0 = inlined_call_operand.hbm [shape: f32[4], index: 0, kind: input, shape index: {}]   ;;  %s1370_s1 = inlined_call_operand.hbm [shape: f32[2,1024], index: 1, kind: input, shape index: {}]   ;;  %s1371_s2 = inlined_call_operand.hbm [shape: bf16[1024,128], index: 2, kind: input, shape index: {}]   ;;  %s1372_s3 = inlined_call_operand.vmem [shape: f32[3,128], index: 3, kind: input, shape index: {}]   ;;  %s1373_s4 = inlined_call_operand.vmem [shape: f32[3,128], index: 4, kind: input, shape index: {}]   ;;  %s1374_s5 = inlined_call_operand.hbm [shape: f32[2,128], index: 5, kind: output, shape index: {}]  }
   0x1   :  { %s1168_s20 = scalar_lea.hbm %s1369_s0, 16 }
   0x2   :  { %p1169_p0 = scmp.ne.s32.totalorder %s1369_s0, %s1168_s20  ;;  %p1172_p1 = scmp.lt.u32.totalorder %s1168_s20, %s1369_s0 }
   0x4   :  { %p1174_p2 = pnand %p1172_p1, %p1169_p0 }
   0x6   :  { %1177 = shalt.err (!%p1174_p2)  }
   0x7   :  { %s1252_s25 = smov [#allocation3]  }
   0x8   :  { %11 = dma.hbm_to_smem %s1369_s0, 16, %s1252_s25, [#allocation2] }
   0x9   :  { %1244 = dma.done.wait [#allocation2], 16 }
   0xa   :  { %1245 = vsyncadd [#allocation2], 4294967280 }
   0xb   :  { %13 = sfence }
   0xc   :  { %14 = vsyncpa [#allocation5], 0 }
   0xd   :  { %15 = vsyncpa [#allocation8], 0 }
   0xe   :  { %16 = vsyncpa [#allocation6], 0 }
   0xf   :  { %21 = vsyncadd [#allocation5], 768  ;;  %s1253_s28 = smov [#allocation4]   ;;  %s1178_s7 = scalar_lea.hbm %s1370_s1, 256 }
  0x10   :  { %s22_s29 = sshll.u32 %s1253_s28, 4  ;;  %p1179_p3 = scmp.ne.s32.totalorder %s1370_s1, %s1178_s7  ;;  %s23_s29 = int_to_ptr.vmem [resolvable:$true] %s22_s29 }
  0x11   :  { %p1182_p4 = scmp.lt.u32.totalorder %s1178_s7, %s1370_s1 }
  0x13   :  { %p1184_p5 = pnand %p1182_p4, %p1179_p3 }
  0x15   :  { %1187 = shalt.err (!%p1184_p5)
}
  0x16   :  { %s1188_s11 = scalar_lea.vmem %s23_s29, 256  ;;  %s1192_s12 = scalar_lea.vmem %s23_s29, 1024 }
  0x17   :  { %p1189_p6 = scmp.ne.s32.totalorder %s23_s29, %s1188_s11  ;;  %p1193_p7 = scmp.lt.s32.totalorder %s23_s29, %s23_s29 }
  0x18   :  { %p1194_p8 = scmp.lt.s32.totalorder %s1192_s12, %s1188_s11 }
  0x1a   :  { %p1195_p9 = por %p1194_p8, %p1193_p7 }
  0x1c   :  { %p1196_p10 = pnand %p1195_p9, %p1189_p6 }
  0x1e   :  { %1199 = shalt.err (!%p1196_p10)
}
  0x1f   :  { %s1254_s13 = smov 256   ;;  %s1255_s14 = smov 16  }
  0x20   :  { %28 = dma.hbm_to_vmem [thread:$0]  %s1370_s1, 256, %s23_s29, [#allocation5], %s1254_s13, %s1254_s13, %s1255_s14  }
  0x21   :  { %s1256_s17 = smov [#allocation7]   ;;  %s1200_s21 = scalar_lea.hbm %s1371_s2, 8192 }
  0x22   :  { %s34_s18 = sshll.u32 %s1256_s17, 4  ;;  %p1201_p11 = scmp.ne.s32.totalorder %s1371_s2, %s1200_s21  ;;  %s35_s18 = int_to_ptr.vmem [resolvable:$true] %s34_s18 }
  0x23   :  { %p1204_p12 = scmp.lt.u32.totalorder %s1200_s21, %s1371_s2 }
  0x25   :  { %p1206_p13 = pnand %p1204_p12, %p1201_p11 }
  0x27   :  { %1209 = shalt.err (!%p1206_p13)
}
  0x28   :  { %s1210_s26 = scalar_lea.vmem %s35_s18, 8192  ;;  %p1215_p1 = scmp.lt.s32.totalorder %s35_s18, %s35_s18 }
  0x29   :  { %p1211_p0 = scmp.ne.s32.totalorder %s35_s18, %s1210_s26  ;;  %p1216_p2 = scmp.lt.s32.totalorder %s1210_s26, %s1210_s26 }
  0x2b   :  { %p1217_p3 = por %p1216_p2, %p1215_p1 }
  0x2d   :  { %p1218_p4 = pnand %p1217_p3, %p1211_p0 }
  0x2f   :  { %1221 = shalt.err (!%p1218_p4)
}
  0x30   :  { %s1257_s1 = smov 64   ;;  %s1258_s27 = smov 4  }
  0x31   :  { %40 = dma.hbm_to_vmem [thread:$0]  %s1371_s2, 8192, %s35_s18, [#allocation8], %s1257_s1, %s1257_s1, %s1258_s27  }
  0x32   :  { %1246 = dma.done.wait [#allocation5], 1024  }
  0x33   :  { %1247 = vsyncadd [#allocation5], 4294966272 }
  0x34   :  { %1248 = dma.done.wait [#allocation8], 8192  }
  0x35   :  { %1249 = vsyncadd [#allocation8], 4294959104  ;;  %v1088_v0 = vld [vmem:[#allocation7 + $0x40] sm:$0xff]   ;;  %v1092_v4 = vld [vmem:[#allocation7 + $0x48] sm:$0xff]   ;;  %v1259_v24 = vmov 1983009808   ;;  %v85_v26 = vlaneseq }
  0x36   :  { %v1089_v1 = vld [vmem:[#allocation7 + $0xc0] sm:$0xff]   ;;  %989 = vmatprep.subr.bf16.mxu0 %v1088_v0  ;;  %v1093_v5 = vld [vmem:[#allocation7 + $0xc8] sm:$0xff]   ;;  %v1096_v8 = vld [vmem:[#allocation7 + $0x50] sm:$0xff]   ;;  %v83_v25 = vunpack.c.l.s4 %v1259_v24  ;;  %s52_s6 = sld [smem:[#allocation3]]  ;;  %s917_s0 = sld [smem:[#allocation3 + $0x2]] }
  0x37   :  { %v1090_v2 = vld [vmem:[#allocation7] sm:$0xff]   ;;  %1011 = vmatprep.subr.bf16.mxu1 %v1089_v1  ;;  %v1094_v6 = vld [vmem:[#allocation7 + $0x8] sm:$0xff]   ;;  %v1097_v9 = vld [vmem:[#allocation7 + $0xd0] sm:$0xff]   ;;  %v86_v32 = vshrl.u32 %v85_v26, 7  ;;  %s916_s11 = sld [smem:[#allocation3 + $0x1]]  ;;  %s918_s12 = sld [smem:[#allocation3 + $0x3]] }
  0x38   :  { %v1091_v3 = vld [vmem:[#allocation7 + $0x80] sm:$0xff]   ;;  %990 = vmatpush3.bf16.msra.mxu0 %v1090_v2  ;;  %v1095_v7 = vld [vmem:[#allocation7 + $0x88] sm:$0xff]   ;;  %v1098_v10 = vld [vmem:[#allocation7 + $0x10] sm:$0xff]   ;;  %v84_v31 = vunpack.c.0.s8 %v83_v25 }
  0x39   :  { %1012 = vmatpush3.bf16.msra.mxu1 %v1091_v3  ;;  %991 = vmatprep.subr.bf16.mxu0 %v1092_v4  ;;  %v1099_v11 = vld [vmem:[#allocation7 + $0x90] sm:$0xff]   ;;  %v1100_v12 = vld [vmem:[#allocation7 + $0x58] sm:$0xff]   ;;  %v1104_v16 = vld [vmem:[#allocation7 + $0x60] sm:$0xff]  }
  0x3a   :  { %1013 = vmatprep.subr.bf16.mxu1 %v1093_v5  ;;  %v1101_v13 = vld [vmem:[#allocation7 + $0xd8] sm:$0xff]   ;;  %v1105_v17 = vld [vmem:[#allocation7 + $0xe0] sm:$0xff]   ;;  %v1108_v20 = vld [vmem:[#allocation7 + $0x68] sm:$0xff]   ;;  %v1329_v37 = vsub.s32 %v84_v31, %v86_v32 }
  0x3b   :  { %v1102_v14 = vld [vmem:[#allocation7 + $0x18] sm:$0xff]   ;;  %v1106_v18 = vld [vmem:[#allocation7 + $0x20] sm:$0xff]   ;;  %v1109_v21 = vld [vmem:[#allocation7 + $0xe8] sm:$0xff]  }
  0x3c   :  { %992 = vmatpush3.bf16.msra.mxu0 %v1094_v6  ;;  %v1103_v15 = vld [vmem:[#allocation7 + $0x98] sm:$0xff]   ;;  %v1107_v19 = vld [vmem:[#allocation7 + $0xa0] sm:$0xff]   ;;  %v1110_v22 = vld [vmem:[#allocation7 + $0x28] sm:$0xff]  }
  0x3d   :  { %1014 = vmatpush3.bf16.msra.mxu1 %v1095_v7  ;;  %993 = vmatprep.subr.bf16.mxu0 %v1096_v8  ;;  %v1111_v23 = vld [vmem:[#allocation7 + $0xa8] sm:$0xff]   ;;  %v1112_v27 = vld [vmem:[#allocation7 + $0x70] sm:$0xff]   ;;  %v1116_v33 = vld [vmem:[#allocation7 + $0x78] sm:$0xff]  }
  0x3e   :  { %1015 = vmatprep.subr.bf16.mxu1 %v1097_v9  ;;  %v1113_v28 = vld [vmem:[#allocation7 + $0xf0] sm:$0xff]   ;;  %v1117_v34 = vld [vmem:[#allocation7 + $0xf8] sm:$0xff]   ;;  %v1126_v44 = vld [vmem:[#allocation7 + $0x140] sm:$0xff]  }
  0x3f   :  { %v1114_v29 = vld [vmem:[#allocation7 + $0x30] sm:$0xff]   ;;  %v1118_v35 = vld [vmem:[#allocation7 + $0x38] sm:$0xff]   ;;  %v1127_v47 = vld [vmem:[#allocation7 + $0x1c0] sm:$0xff]  }
  0x40   :  { %994 = vmatpush3.bf16.msra.mxu0 %v1098_v10  ;;  %v1115_v30 = vld [vmem:[#allocation7 + $0xb0] sm:$0xff]   ;;  %v1119_v36 = vld [vmem:[#allocation7 + $0xb8] sm:$0xff]   ;;  %v1128_v50 = vld [vmem:[#allocation7 + $0x100] sm:$0xff]  }
  0x41   :  { %1016 = vmatpush3.bf16.msra.mxu1 %v1099_v11  ;;  %995 = vmatprep.subr.bf16.mxu0 %v1100_v12  ;;  %v1120_v38 = vld [vmem:[#allocation4] ss:$16 sps:$4 sm:$0xff]   ;;  %v1124_v40 = vld [vmem:[#allocation4 + $0x4] ss:$16 sps:$4 sm:$0xff]   ;;  %v1130_v56 = vld [vmem:[#allocation7 + $0x148] sm:$0xff]  }
  0x42   :  { %1017 = vmatprep.subr.bf16.mxu1 %v1101_v13  ;;  %v1122_v39 = vld [vmem:[#allocation4 + $0x20] ss:$16 sps:$4 sm:$0xff]   ;;  %v1125_v41 = vld [vmem:[#allocation4 + $0x24] ss:$16 sps:$4 sm:$0xff]   ;;  %v88_v42 = vrot.slane %v1120_v38, %v1329_v37  ;;  %v95_v45 = vrot.slane %v1124_v40, %v1329_v37  ;;  %v1131_v59 = vld [vmem:[#allocation7 + $0x1c8] sm:$0xff]  }
  0x43   :  { %v102_v43 = vrot.slane %v1122_v39, %v1329_v37  ;;  %v109_v46 = vrot.slane %v1125_v41, %v1329_v37  ;;  %v1129_v53 = vld [vmem:[#allocation7 + $0x180] sm:$0xff]   ;;  %v1132_v60 = vld [vmem:[#allocation7 + $0x108] sm:$0xff]   ;;  %v1134_v62 = vld [vmem:[#allocation7 + $0x150] sm:$0xff]  }
  0x44   :  { %996 = vmatpush3.bf16.msra.mxu0 %v1102_v14  ;;  %v1133_v61 = vld [vmem:[#allocation7 + $0x188] sm:$0xff]   ;;  %v1135_v63 = vld [vmem:[#allocation7 + $0x1d0] sm:$0xff]   ;;  %v1138_v2 = vld [vmem:[#allocation7 + $0x158] sm:$0xff]  }
  0x45   :  { %1018 = vmatpush3.bf16.msra.mxu1 %v1103_v15  ;;  %997 = vmatprep.subr.bf16.mxu0 %v1104_v16  ;;  %v111_v48 = vcombine.high %v88_v42, %v102_v43  ;;  %v110_v49 = vcombine.low %v88_v42, %v102_v43  ;;  %v113_v51 = vcombine.high %v95_v45, %v109_v46  ;;  %v1136_v0 = vld [vmem:[#allocation7 + $0x110] sm:$0xff]   ;;  %v1139_v3 = vld [vmem:[#allocation7 + $0x1d8] sm:$0xff]   ;;  %v1142_v6 = vld [vmem:[#allocation7 + $0x160] sm:$0xff]  }
  0x46   :  { %1019 = vmatprep.subr.bf16.mxu1 %v1105_v17  ;;  %v112_v52 = vcombine.low %v95_v45, %v109_v46  ;;  %v1137_v1 = vld [vmem:[#allocation7 + $0x190] sm:$0xff]   ;;  %v1140_v4 = vld [vmem:[#allocation7 + $0x118] sm:$0xff]   ;;  %v1143_v7 = vld [vmem:[#allocation7 + $0x1e0] sm:$0xff]  }
  0x47   :  { %v159_v54 = vpack.c.bf16 %v111_v48, %v111_v48  ;;  %v158_v55 = vpack.c.bf16 %v110_v49, %v110_v49  ;;  %v161_v57 = vpack.c.bf16 %v113_v51, %v113_v51  ;;  %v1141_v5 = vld [vmem:[#allocation7 + $0x198] sm:$0xff]   ;;  %v1144_v8 = vld [vmem:[#allocation7 + $0x120] sm:$0xff]   ;;  %v1146_v10 = vld [vmem:[#allocation7 + $0x168] sm:$0xff]  }
  0x48   :  { %998 = vmatpush3.bf16.msra.mxu0 %v1106_v18  ;;  %v160_v58 = vpack.c.bf16 %v112_v52, %v112_v52  ;;  %v1145_v9 = vld [vmem:[#allocation7 + $0x1a0] sm:$0xff]   ;;  %v1147_v11 = vld [vmem:[#allocation7 + $0x1e8] sm:$0xff]   ;;  %v1150_v14 = vld [vmem:[#allocation7 + $0x170] sm:$0xff]  }
  0x49   :  { %1020 = vmatpush3.bf16.msra.mxu1 %v1107_v19  ;;  %999 = vmatprep.subr.bf16.mxu0 %v1108_v20  ;;  %v1148_v12 = vld [vmem:[#allocation7 + $0x128] sm:$0xff]   ;;  %v1151_v15 = vld [vmem:[#allocation7 + $0x1f0] sm:$0xff]   ;;  %v1154_v18 = vld [vmem:[#allocation7 + $0x178] sm:$0xff]  }
  0x4a   :  { %1021 = vmatprep.subr.bf16.mxu1 %v1109_v21  ;;  %714 = vmatprep.mubr.bf16.mxu0 %v159_v54  ;;  %v1149_v13 = vld [vmem:[#allocation7 + $0x1a8] sm:$0xff]   ;;  %v1152_v16 = vld [vmem:[#allocation7 + $0x130] sm:$0xff]   ;;  %v1155_v19 = vld [vmem:[#allocation7 + $0x1f8] sm:$0xff]  }
  0x4b   :  { %754 = vmatprep.mubr.bf16.mxu1 %v161_v57  ;;  %v1153_v17 = vld [vmem:[#allocation7 + $0x1b0] sm:$0xff]   ;;  %v1156_v20 = vld [vmem:[#allocation7 + $0x138] sm:$0xff]  }
  0x4c   :  { %1000 = vmatpush3.bf16.msra.mxu0 %v1110_v22  ;;  %v1157_v21 = vld [vmem:[#allocation7 + $0x1b8] sm:$0xff]   ;;  %v919_v41 = vld [vmem:[%s1372_s3] ss:$0 sm:$0xff] }
  0x4d   :  { %1022 = vmatpush3.bf16.msra.mxu1 %v1111_v23  ;;  %1001 = vmatprep.subr.bf16.mxu0 %v1112_v27  ;;  %v1158_v22 = vld [vmem:[#allocation4 + $0x8] ss:$16 sps:$4 sm:$0xff]   ;;  %v1162_v24 = vld [vmem:[#allocation4 + $0xc] ss:$16 sps:$4 sm:$0xff]  }
  0x4e   :  { %1023 = vmatprep.subr.bf16.mxu1 %v1113_v28  ;;  %v1160_v23 = vld [vmem:[#allocation4 + $0x28] ss:$16 sps:$4 sm:$0xff]   ;;  %v1163_v25 = vld [vmem:[#allocation4 + $0x2c] ss:$16 sps:$4 sm:$0xff]   ;;  %v124_v26 = vrot.slane %v1158_v22, %v1329_v37  ;;  %v131_v28 = vrot.slane %v1162_v24, %v1329_v37 }
  0x4f   :  { %v138_v27 = vrot.slane %v1160_v23, %v1329_v37 }
  0x50   :  { %1002 = vmatpush3.bf16.msra.mxu0 %v1114_v29  ;;  %v145_v29 = vrot.slane %v1163_v25, %v1329_v37 }
  0x51   :  { %1024 = vmatpush3.bf16.msra.mxu1 %v1115_v30  ;;  %1003 = vmatprep.subr.bf16.mxu0 %v1116_v33  ;;  %v147_v30 = vcombine.high %v124_v26, %v138_v27  ;;  %v146_v31 = vcombine.low %v124_v26, %v138_v27 }
  0x52   :  { %1025 = vmatprep.subr.bf16.mxu1 %v1117_v34  ;;  %v149_v32 = vcombine.high %v131_v28, %v145_v29  ;;  %v148_v33 = vcombine.low %v131_v28, %v145_v29 }
  0x53   :  { %v163_v34 = vpack.c.bf16 %v147_v30, %v147_v30 }
  0x54   :  { %1004 = vmatpush3.bf16.msra.mxu0 %v1118_v35  ;;  %v162_v35 = vpack.c.bf16 %v146_v31, %v146_v31  ;;  %v164_v38 = vpack.c.bf16 %v148_v33, %v148_v33 }
  0x55   :  { %1026 = vmatpush3.bf16.msra.mxu1 %v1119_v36  ;;  %1033 = vmatprep.subr.bf16.mxu0 %v1126_v44  ;;  %v165_v36 = vpack.c.bf16 %v149_v32, %v149_v32 }
  0x56   :  { %1055 = vmatprep.subr.bf16.mxu1 %v1127_v47 }
  0x57   :  { %715 = vmatmul.mubr.bf16.vlgmr.msra.gmra.mrb[0].mxu0 %v158_v55 }
  0x58   :  { %755 = vmatmul.mubr.bf16.vlgmr.msra.gmra.mrb[0].mxu1 %v160_v58  ;;  %1034 = vmatpush3.bf16.msra.mxu0 %v1128_v50 }
  0x59   :  { %1056 = vmatpush3.bf16.msra.mxu1 %v1129_v53  ;;  %1035 = vmatprep.subr.bf16.mxu0 %v1130_v56 }
  0x5a   :  { %1057 = vmatprep.subr.bf16.mxu1 %v1131_v59  ;;  %794 = vmatprep.mubr.bf16.mxu0 %v163_v34 }
  0x5b   :  { %834 = vmatprep.mubr.bf16.mxu1 %v165_v36 }
  0x5c   :  { %1036 = vmatpush3.bf16.msra.mxu0 %v1132_v60 }
  0x5d   :  { %1058 = vmatpush3.bf16.msra.mxu1 %v1133_v61  ;;  %1037 = vmatprep.subr.bf16.mxu0 %v1134_v62  ;;  %v843_v62 = vstv %s52_s6 }
  0x5e   :  { %1059 = vmatprep.subr.bf16.mxu1 %v1135_v63 }
  0x60   :  { %1038 = vmatpush3.bf16.msra.mxu0 %v1136_v0  ;;  %v984_v0 = vld [vmem:[%s1372_s3 + $0x1] ss:$0 sm:$0xff] }
  0x61   :  { %1060 = vmatpush3.bf16.msra.mxu1 %v1137_v1  ;;  %1039 = vmatprep.subr.bf16.mxu0 %v1138_v2 }
  0x62   :  { %1061 = vmatprep.subr.bf16.mxu1 %v1139_v3 }
  0x64   :  { %1040 = vmatpush3.bf16.msra.mxu0 %v1140_v4  ;;  %v985_v4 = vld [vmem:[%s1372_s3 + $0x2] ss:$0 sm:$0xff] }
  0x65   :  { %1062 = vmatpush3.bf16.msra.mxu1 %v1141_v5  ;;  %1041 = vmatprep.subr.bf16.mxu0 %v1142_v6  ;;  %v853_v6 = vstv %s917_s0 }
  0x66   :  { %1063 = vmatprep.subr.bf16.mxu1 %v1143_v7  ;;  %v865_v7 = vstv %s916_s11 }
  0x68   :  { %1042 = vmatpush3.bf16.msra.mxu0 %v1144_v8 }
  0x69   :  { %1064 = vmatpush3.bf16.msra.mxu1 %v1145_v9  ;;  %1043 = vmatprep.subr.bf16.mxu0 %v1146_v10  ;;  %v862_v10 = vstv %s918_s12 }
  0x6a   :  { %1065 = vmatprep.subr.bf16.mxu1 %v1147_v11 }
  0x6c   :  { %1044 = vmatpush3.bf16.msra.mxu0 %v1148_v12 }
  0x6d   :  { %1066 = vmatpush3.bf16.msra.mxu1 %v1149_v13  ;;  %1045 = vmatprep.subr.bf16.mxu0 %v1150_v14 }
  0x6e   :  { %1067 = vmatprep.subr.bf16.mxu1 %v1151_v15 }
  0x70   :  { %1046 = vmatpush3.bf16.msra.mxu0 %v1152_v16  ;;  %v986_v16 = vld [vmem:[%s1373_s4 + $0x1] ss:$0 sm:$0xff] }
  0x71   :  { %1068 = vmatpush3.bf16.msra.mxu1 %v1153_v17  ;;  %1047 = vmatprep.subr.bf16.mxu0 %v1154_v18  ;;  %v987_v17 = vld [vmem:[%s1373_s4 + $0x2] ss:$0 sm:$0xff] }
  0x72   :  { %1069 = vmatprep.subr.bf16.mxu1 %v1155_v19 }
  0x74   :  { %1048 = vmatpush3.bf16.msra.mxu0 %v1156_v20 }
  0x75   :  { %1070 = vmatpush3.bf16.msra.mxu1 %v1157_v21  ;;  %v988_v21 = vld [vmem:[%s1373_s4] ss:$0 sm:$0xff] }
  0x77   :  { %795 = vmatmul.mubr.bf16.vlgmr.msra.gmra.mrb[4].mxu0 %v162_v35 }
  0x78   :  { %835 = vmatmul.mubr.bf16.vlgmr.msra.gmra.mrb[4].mxu1 %v164_v38 }
 0x12a   :  { %v1005_v39 = vpop.f32.mrb[0].mxu0 }
 0x12b   :  { %v1027_v40 = vpop.f32.mrb[0].mxu1  ;;  %v1006_v37 = vpop.f32.mrb[1].mxu0 }
 0x12c   :  { %v1007_v42 = vadd.f32 %v1006_v37, %v1005_v39  ;;  %v1028_v43 = vpop.f32.mrb[1].mxu1  ;;  %v1008_v44 = vpop.f32.mrb[2].mxu0 }
 0x12d   :  { %v1029_v45 = vadd.f32 %v1028_v43, %v1027_v40  ;;  %v1030_v46 = vpop.f32.mrb[2].mxu1  ;;  %v1009_v47 = vpop.f32.mrb[3].mxu0 }
 0x12e   :  { %v717_v48 = vadd.f32 %v1007_v42, %v919_v41  ;;  %v1031_v49 = vpop.f32.mrb[3].mxu1 }
 0x130   :  { %v757_v50 = vadd.f32 %v1029_v45, %v717_v48 }
 0x14a   :  { %v1049_v51 = vpop.f32.mrb[4].mxu0 }
 0x14b   :  { %v1071_v52 = vpop.f32.mrb[4].mxu1  ;;  %v1050_v53 = vpop.f32.mrb[5].mxu0 }
 0x14c   :  { %v1051_v54 = vadd.f32 %v1050_v53, %v1049_v51  ;;  %v1072_v55 = vpop.f32.mrb[5].mxu1  ;;  %v1052_v56 = vpop.f32.mrb[6].mxu0 }
 0x14d   :  { %v1073_v57 = vadd.f32 %v1072_v55, %v1071_v52  ;;  %v1074_v58 = vpop.f32.mrb[6].mxu1  ;;  %v1053_v59 = vpop.f32.mrb[7].mxu0 }
 0x14e   :  { %v797_v60 = vadd.f32 %v1051_v54, %v757_v50  ;;  %v1075_v61 = vpop.f32.mrb[7].mxu1 }
 0x150   :  { %v837_v63 = vadd.f32 %v1073_v57, %v797_v60 }
 0x152   :  { %vm842_vm0 = vcmp.gt.f32.partialorder %v837_v63, 0.0  ;;  %v844_v1 = vmul.f32 %v843_v62, %v837_v63 }
 0x154   :  { %v845_v2 = vsel %vm842_vm0, %v837_v63, %v844_v1 }
 0x155   :  { %v850_v3 = vmul.f32 %v984_v0, %v845_v2  ;;  %v859_v5 = vmul.f32 %v985_v4, %v845_v2 }
 0x157   :  { %851 = vadd.xlane.f32.xlu0 %v850_v3 }
 0x15b   :  { %860 = vadd.xlane.f32.xlu0 %v859_v5 }
 0x1e4   :  { %v852_v8 = vpop.xlane.xlu0 %851 }
 0x1e5   :  { %v854_v9 = vadd.f32 %v853_v6, %v852_v8 }
 0x1e7   :  { %v866_v11 = vmul.f32 %v865_v7, %v854_v9  ;;  %vm864_vm1 = vcmp.gt.f32.partialorder %v854_v9, 0.0 }
 0x1e8   :  { %v861_v12 = vpop.xlane.xlu0 %860 }
 0x1e9   :  { %v863_v13 = vadd.f32 %v862_v10, %v861_v12  ;;  %v867_v14 = vsel %vm864_vm1, %v854_v9, %v866_v11 }
 0x1ea   :  { %v875_v19 = vmul.f32 %v986_v16, %v867_v14 }
 0x1eb   :  { %vm868_vm2 = vcmp.gt.f32.partialorder %v863_v13, 0.0  ;;  %v869_v15 = vmul.f32 %v865_v7, %v863_v13 }
 0x1ed   :  { %v870_v18 = vsel %vm868_vm2, %v863_v13, %v869_v15 }
 0x1ee   :  { %v880_v20 = vmul.f32 %v987_v17, %v870_v18 }
 0x1f0   :  { %v881_v22 = vadd.f32 %v880_v20, %v875_v19 }
 0x1f2   :  { %v886_v23 = vadd.f32 %v988_v21, %v881_v22 }
 0x1f4   :  { %887 = vmax.xlane.f32.xlu1 %v886_v23 }
 0x281   :  { %v888_v24 = vpop.xlane.xlu1 %887 }
 0x282   :  { %v889_v25 = vsub.f32 %v886_v23, %v888_v24 }
 0x284   :  { %v890_v26 = vmul.f32 1.442695, %v889_v25 }
 0x286   :  { %1164 = vpow2.f32 %v890_v26 }
 0x290   :  { %v1165_v27 = vpop.eup %1164 }
 0x291   :  { %892 = vadd.xlane.f32.xlu1 %v1165_v27 }
 0x31e   :  { %v893_v28 = vpop.xlane.xlu1 %892 }
 0x31f   :  { %1166 = vlog2.f32 %v893_v28 }
 0x329   :  { %v1167_v29 = vpop.eup %1166 }
 0x32a   :  { %v895_v30 = vmul.f32 0.6931472, %v1167_v29 }
 0x32c   :  { %v896_v31 = vsub.f32 %v889_v25, %v895_v30 }
 0x32e   :  { %897 = vst [vmem:[#allocation9] sm:$0xff] %v896_v31 }
 0x32f   :  { %902 = vsyncadd [#allocation6], 96  ;;  %s1260_s18 = smov [#allocation9]  }
 0x330   :  { %s903_s19 = sshll.u32 %s1260_s18, 4  ;;  %s904_s19 = int_to_ptr.vmem [resolvable:$true] %s903_s19 }
 0x331   :  { %s1222_s4 = scalar_lea.vmem %s904_s19, 32  ;;  %s1226_s20 = scalar_lea.vmem %s904_s19, 128 }
 0x332   :  { %p1223_p5 = scmp.ne.s32.totalorder %s904_s19, %s1222_s4  ;;  %p1227_p6 = scmp.lt.s32.totalorder %s904_s19, %s904_s19 }
 0x333   :  { %p1228_p7 = scmp.lt.s32.totalorder %s1226_s20, %s1222_s4 }
 0x335   :  { %p1229_p8 = por %p1228_p7, %p1227_p6 }
 0x337   :  { %p1230_p9 = pnand %p1229_p8, %p1223_p5 }
 0x339   :  { %1233 = shalt.err (!%p1230_p9)
}
 0x33a   :  { %s1234_s23 = scalar_lea.hbm %s1374_s5, 32 }
 0x33b   :  { %p1235_p10 = scmp.ne.s32.totalorder %s1374_s5, %s1234_s23  ;;  %p1238_p11 = scmp.lt.u32.totalorder %s1234_s23, %s1374_s5 }
 0x33d   :  { %p1240_p12 = pnand %p1238_p11, %p1235_p10 }
 0x33f   :  { %1243 = shalt.err (!%p1240_p12)
}
 0x340   :  { %s1261_s27 = smov 32   ;;  %s1262_s28 = smov 2  }
 0x341   :  { %909 = dma.vmem_to_hbm [thread:$0]  %s904_s19, 32, %s1374_s5, [#allocation6], %s1261_s27, %s1261_s27, %s1262_s28  }
 0x342   :  { %1250 = dma.done.wait [#allocation6], 128  }
 0x343   :  { %1251 = vsyncadd [#allocation6], 4294967168 }
 0x344   :  { %913 = vsyncpa [#allocation5], 1 }
 0x345   :  { %914 = vsyncpa [#allocation8], 1 }
 0x346   :  { %915 = vsyncpa [#allocation6], 1 }

</bundles_post_ra>
